<compile_context>
chip_gen: v7x
topology: tpu7x:2x2x1
jax: 0.10.0
libtpu: 0.0.40
codegen_flags: <defaults>
</compile_context>

<pallas_src>
import functools

import jax
import jax.numpy as jnp
from jax.experimental import pallas as pl
from jax.experimental.pallas import tpu as pltpu


def _round_up(x, m):
    return ((x + m - 1) // m) * m


def _one_hot_gather(idx_col, emb):
    """logits[n, :] = emb[idx_col[n, 0], :] via one-hot @ table on the MXU.

    one_hot weights are exactly 0/1, so a HIGHEST-precision f32 matmul returns
    the table rows exactly (bit-exact gather, no O(V) loop, no scalar path).
    Out-of-range ids (clipped-block garbage) produce an all-zero row.
    """
    tile_n = idx_col.shape[0]
    n_rows = emb.shape[0]
    lane = jax.lax.broadcasted_iota(jnp.int32, (tile_n, n_rows), 1)
    one_hot = (lane == idx_col).astype(jnp.float32)
    return jax.lax.dot(
        one_hot, emb,
        precision=jax.lax.Precision.HIGHEST,
        preferred_element_type=jnp.float32,
    )


# --------------------------------------------------------------------------
# Kernels
# --------------------------------------------------------------------------

def _bigram_logits_kernel(idx_ref, emb_ref, logits_ref):
    """Inference path: vectorized row gather emb[idx[n], :] -> logits[n, :]."""
    logits_ref[...] = _one_hot_gather(idx_ref[...], emb_ref[...])


def _bigram_train_kernel(n_valid, idx_ref, tgt_ref, emb_ref, logits_ref, part_ref):
    """Training path: vectorized gather + fused cross-entropy partial sum.

    n_valid (static) is the number of real rows; rows >= n_valid (clipped-block
    garbage or padding) are masked out of both the `picked` and lse sums, so
    nothing depends on the contents of padded idx/target rows.
    """
    tile_n, V = logits_ref.shape
    base = pl.program_id(0) * tile_n

    logits = _one_hot_gather(idx_ref[...], emb_ref[...])        # (tile_n, V) f32
    logits_ref[...] = logits                                    # one unmasked slab

    rows = base + jax.lax.broadcasted_iota(jnp.int32, (tile_n, 1), 0)
    valid = rows < n_valid                                      # (tile_n, 1) bool

    # picked = logits[n, targets[n]] summed over valid rows (vectorized select).
    lane = jax.lax.broadcasted_iota(jnp.int32, (tile_n, V), 1)
    tgt = tgt_ref[...]                                          # (tile_n, 1) int32
    picked_sum = jnp.sum(jnp.where((lane == tgt) & valid, logits, 0.0),
                         axis=(0, 1), keepdims=True)            # (1, 1)

    # logsumexp over each row of the tile (EUP exp, XLU reductions).
    m = jnp.max(logits, axis=-1, keepdims=True)
    lse = jnp.log(jnp.sum(jnp.exp(logits - m), axis=-1, keepdims=True)) + m
    lse_sum = jnp.sum(jnp.where(valid, lse, 0.0),
                      axis=(0, 1), keepdims=True)               # (1, 1)

    # Per-tile partial sum -> independent grid steps ("parallel" axis, 2 TCs on v7x).
    part_ref[...] = (lse_sum - picked_sum).reshape(1, 1, 1)


# --------------------------------------------------------------------------
# Wrapper (mirrors BigramLanguageModel.forward)
# --------------------------------------------------------------------------

def bigram_forward(idx, emb_table, targets=None, *, tile_n=None):
    """idx: (B, T) int32; targets: (B, T) int32 or None.

    Returns (logits, loss):
      targets is None -> logits (B, T, V), loss None
      else            -> logits (B*T, V),  loss scalar   (matches torch .view)
    """
    B, T = idx.shape
    V = emb_table.shape[0]
    N = B * T
    emb_table = emb_table.astype(jnp.float32)
    # TODO(synk): optional bf16 logits would halve HBM write traffic but is no
    # longer bit-identical to the f32 PyTorch reference; kept f32 here.

    # ---- row-tile choice + VMEM budget (portable down to v7x's 64 MiB/TC) ----
    n_floor = max(8, (N // 8) * 8)          # largest usable multiple-of-8 tile
    if tile_n is None:
        tile_n = 2048                       # multiple of 256: keeps v6e/v7x MXU fed
    tile_n = max(8, _round_up(tile_n, 8))
    tile_n = min(tile_n, n_floor)

    itemsize = 4

    def _vmem_est(t):
        # resident table (pipeline keeps 2 buffers) + double-buffered logits tile
        # + one-hot temporary + idx/tgt tiles + slack.
        return (2 * V * V + 3 * t * V + 4 * t) * itemsize + (1 << 20)

    vmem_cap = 40 * 2 ** 20
    while tile_n > 8 and _vmem_est(tile_n) > vmem_cap:
        tile_n = max(8, _round_up(tile_n // 2, 8))
    # TODO(synk): for vocabularies whose VxV f32 table alone exceeds VMEM, keep
    # the table in HBM (memory_space=pl.ANY) and DMA-gather rows per tile.

    pad_out = tile_n > N                     # only when N < 8 (tiny inputs)
    rows_out = tile_n if pad_out else N
    num_tiles = pl.cdiv(rows_out, tile_n)

    idx_col = idx.reshape(N, 1).astype(jnp.int32)
    if pad_out:
        idx_col = jnp.pad(idx_col, ((0, rows_out - N), (0, 0)))

    # Cap well below v7x's 64 MiB/TC physical VMEM; for small V this stays at 16 MiB.
    vmem_limit = int(min(44 * 2 ** 20,
                         max(16 * 2 ** 20, _vmem_est(tile_n) + (2 << 20))))
    cparams = pltpu.CompilerParams(
        dimension_semantics=("parallel",),
        vmem_limit_bytes=vmem_limit,
    )

    emb_spec = pl.BlockSpec((V, V), lambda i: (0, 0))       # VMEM-resident table
    idx_spec = pl.BlockSpec((tile_n, 1), lambda i: (i, 0))  # VMEM-tiled ids
    logits_spec = pl.BlockSpec((tile_n, V), lambda i: (i, 0))

    if targets is None:
        logits = pl.pallas_call(
            _bigram_logits_kernel,
            out_shape=jax.ShapeDtypeStruct((rows_out, V), jnp.float32),
            grid=(num_tiles,),
            in_specs=[idx_spec, emb_spec],
            out_specs=logits_spec,
            compiler_params=cparams,
        )(idx_col, emb_table)
        if pad_out:
            logits = logits[:N]
        return logits.reshape(B, T, V), None

    tgt_col = targets.reshape(N, 1).astype(jnp.int32)
    if pad_out:
        tgt_col = jnp.pad(tgt_col, ((0, rows_out - N), (0, 0)))

    kernel = functools.partial(_bigram_train_kernel, N)
    logits, partials = pl.pallas_call(
        kernel,
        out_shape=(
            jax.ShapeDtypeStruct((rows_out, V), jnp.float32),
            jax.ShapeDtypeStruct((num_tiles, 1, 1), jnp.float32),
        ),
        grid=(num_tiles,),
        in_specs=[idx_spec, idx_spec, emb_spec],
        out_specs=(
            logits_spec,
            pl.BlockSpec((1, 1, 1), lambda i: (i, 0, 0)),
        ),
        compiler_params=cparams,
    )(idx_col, tgt_col, emb_table)

    if pad_out:
        logits = logits[:N]
    loss = jnp.sum(partials) / N
    return logits, loss


# --------------------------------------------------------------------------
# Pure-JAX reference (matches the PyTorch module) and self-test
# --------------------------------------------------------------------------

def _reference_forward(idx, emb_table, targets):
    B, T = idx.shape
    logits = emb_table[idx]                              # (B, T, V)
    logits_flat = logits.reshape(B * T, -1)
    tgt_flat = targets.reshape(B * T)
    logz = jax.nn.logsumexp(logits_flat, axis=-1)
    picked = jnp.take_along_axis(logits_flat, tgt_flat[:, None], axis=-1)[:, 0]
    loss = jnp.mean(logz - picked)
    return logits_flat, loss


if __name__ == "__main__":
    vocab_size = 128   # V
    B, T = 2, 8        # small batch / sequence

    key = jax.random.PRNGKey(0)
    k_emb, k_idx, k_tgt = jax.random.split(key, 3)

    emb_table = jax.random.normal(k_emb, (vocab_size, vocab_size), dtype=jnp.float32)
    idx = jax.random.randint(k_idx, (B, T), 0, vocab_size, dtype=jnp.int32)
    targets = jax.random.randint(k_tgt, (B, T), 0, vocab_size, dtype=jnp.int32)

    # Training-style call (with targets): flattened logits + scalar loss.
    logits, loss = bigram_forward(idx, emb_table, targets)
    jax.block_until_ready((logits, loss))

    # Inference-style call (no targets): (B, T, V) logits, loss is None.
    logits_inf, loss_inf = bigram_forward(idx, emb_table, None)
    jax.block_until_ready(logits_inf)
    assert loss_inf is None and logits_inf.shape == (B, T, vocab_size)

    # Validate against the pure-JAX reference.
    ref_logits, ref_loss = _reference_forward(idx, emb_table, targets)
    assert logits.shape == (B * T, vocab_size)
    assert jnp.allclose(logits, ref_logits, atol=1e-5, rtol=1e-5)
    assert jnp.allclose(loss, ref_loss, atol=1e-5, rtol=1e-5)
    assert jnp.allclose(logits_inf.reshape(B * T, vocab_size), ref_logits,
                        atol=1e-5, rtol=1e-5)

    # Multi-tile + clipped-final-block path: N=15 rows, forced tile_n=8 -> 2 tiles,
    # last block clipped by one row (no padded logits output, no [:N] copy).
    B2, T2 = 3, 5
    idx2 = jax.random.randint(k_idx, (B2, T2), 0, vocab_size, dtype=jnp.int32)
    tgt2 = jax.random.randint(k_tgt, (B2, T2), 0, vocab_size, dtype=jnp.int32)
    logits2, loss2 = bigram_forward(idx2, emb_table, tgt2, tile_n=8)
    jax.block_until_ready((logits2, loss2))
    ref_logits2, ref_loss2 = _reference_forward(idx2, emb_table, tgt2)
    assert logits2.shape == (B2 * T2, vocab_size)
    assert jnp.allclose(logits2, ref_logits2, atol=1e-5, rtol=1e-5)
    assert jnp.allclose(loss2, ref_loss2, atol=1e-5, rtol=1e-5)

    # TODO(synk): predict_next's torch.multinomial autoregressive sampling loop is
    # host-side control flow, not part of the forward hot path; omitted.
    print("KERNEL_OK")
</pallas_src>

<mosaic_0001>
module attributes {stable_mosaic.version = 11 : i64} {
  func.func @_bigram_train_kernel(%arg0: i32, %arg1: memref<16x1xi32, #tpu.memory_space<vmem>>, %arg2: memref<16x1xi32, #tpu.memory_space<vmem>>, %arg3: memref<128x128xf32, #tpu.memory_space<vmem>>, %arg4: memref<16x128xf32, #tpu.memory_space<vmem>>, %arg5: memref<1x1x1xf32, #tpu.memory_space<vmem>>) attributes {dimension_semantics = [#tpu.dimension_semantics<parallel>], iteration_bounds = array<i64: 1>, scalar_prefetch = 0 : i64, scratch_operands = 0 : i64, tpu.core_type = #tpu.core_type<tc>, window_params = [{transform_indices = @transform_0, window_bounds = array<i64: 16, 1>}, {transform_indices = @transform_1, window_bounds = array<i64: 16, 1>}, {pipeline_mode = #tpu.pipeline_mode<synchronous>, transform_indices = @transform_2, window_bounds = array<i64: 128, 128>}, {transform_indices = @transform_3, window_bounds = array<i64: 16, 128>}, {transform_indices = @transform_4, window_bounds = array<i64: 1, 1, 1>}]} {
    %c16_i32 = arith.constant 16 : i32
    %0 = arith.muli %arg0, %c16_i32 : i32
    %c0 = arith.constant 0 : index
    %c0_0 = arith.constant 0 : index
    %1 = vector.load %arg1[%c0, %c0_0] : memref<16x1xi32, #tpu.memory_space<vmem>>, vector<16x1xi32>
    %c0_1 = arith.constant 0 : index
    %c0_2 = arith.constant 0 : index
    %2 = vector.load %arg3[%c0_1, %c0_2] : memref<128x128xf32, #tpu.memory_space<vmem>>, vector<128x128xf32>
    %3 = tpu.iota {dimensions = array<i32: 1>} : vector<16x128xi32>
    %4 = vector.broadcast %1 : vector<16x1xi32> to vector<16x128xi32>
    %5 = arith.cmpi eq, %3, %4 : vector<16x128xi32>
    %6 = arith.extui %5 : vector<16x128xi1> to vector<16x128xi32>
    %7 = arith.sitofp %6 : vector<16x128xi32> to vector<16x128xf32>
    %cst = arith.constant dense<0.000000e+00> : vector<16x128xf32>
    %8 = tpu.matmul %7, %2, %cst {dimension_numbers = #tpu.dot_dimension_numbers<[1], [0], [0], [1], [0, 0, 1, 1], [], []>, precision = #tpu.contract_precision<fp32>} : vector<16x128xf32>, vector<128x128xf32>, vector<16x128xf32> -> vector<16x128xf32>
    %c0_3 = arith.constant 0 : index
    %c0_4 = arith.constant 0 : index
    %9 = vector.load %arg4[%c0_3, %c0_4] : memref<16x128xf32, #tpu.memory_space<vmem>>, vector<16x128xf32>
    tpu.vector_store %arg4[%c0_3, %c0_4], %8 {strides = array<i32>} : memref<16x128xf32, #tpu.memory_space<vmem>>, vector<16x128xf32>,
    %10 = tpu.iota {dimensions = array<i32: 0>} : vector<16x1xi32>
    %11 = vector.broadcast %0 : i32 to vector<16x1xi32>
    %12 = arith.addi %11, %10 : vector<16x1xi32>
    %c16_i32_5 = arith.constant 16 : i32
    %13 = vector.broadcast %c16_i32_5 : i32 to vector<16x1xi32>
    %14 = arith.cmpi slt, %12, %13 : vector<16x1xi32>
    %15 = tpu.iota {dimensions = array<i32: 1>} : vector<16x128xi32>
    %c0_6 = arith.constant 0 : index
    %c0_7 = arith.constant 0 : index
    %16 = vector.load %arg2[%c0_6, %c0_7] : memref<16x1xi32, #tpu.memory_space<vmem>>, vector<16x1xi32>
    %17 = vector.broadcast %16 : vector<16x1xi32> to vector<16x128xi32>
    %18 = arith.cmpi eq, %15, %17 : vector<16x128xi32>
    %19 = vector.broadcast %14 : vector<16x1xi1> to vector<16x128xi1>
    %20 = arith.andi %18, %19 : vector<16x128xi1>
    %cst_8 = arith.constant 0.000000e+00 : f32
    %21 = vector.broadcast %cst_8 : f32 to vector<16x128xf32>
    %22 = arith.select %20, %8, %21 : vector<16x128xi1>, vector<16x128xf32>
    %23 = vector.shape_cast %22 : vector<16x128xf32> to vector<1x16x128xf32>
    %cst_9 = arith.constant dense<0.000000e+00> : vector<1xf32>
    %24 = vector.multi_reduction <add>, %23, %cst_9 [1, 2] : vector<1x16x128xf32> to vector<1xf32>
    %25 = vector.shape_cast %24 : vector<1xf32> to vector<1x1x1xf32>
    %26 = vector.extract %25[0, 0, 0] : f32 from vector<1x1x1xf32>
    %27 = vector.broadcast %26 : f32 to vector<1x1xf32>
    %cst_10 = arith.constant dense<0xFF800000> : vector<16xf32>
    %28 = vector.multi_reduction <maximumf>, %8, %cst_10 [1] : vector<16x128xf32> to vector<16xf32>
    %29 = vector.shape_cast %28 : vector<16xf32> to vector<16x1xf32>
    %30 = vector.broadcast %29 : vector<16x1xf32> to vector<16x128xf32>
    %31 = arith.subf %8, %30 : vector<16x128xf32>
    %32 = math.exp %31 : vector<16x128xf32>
    %cst_11 = arith.constant dense<0.000000e+00> : vector<16xf32>
    %33 = vector.multi_reduction <add>, %32, %cst_11 [1] : vector<16x128xf32> to vector<16xf32>
    %34 = vector.shape_cast %33 : vector<16xf32> to vector<16x1xf32>
    %35 = math.log %34 : vector<16x1xf32>
    %36 = arith.addf %35, %29 : vector<16x1xf32>
    %cst_12 = arith.constant 0.000000e+00 : f32
    %37 = vector.broadcast %cst_12 : f32 to vector<16x1xf32>
    %38 = arith.select %14, %36, %37 : vector<16x1xi1>, vector<16x1xf32>
    %39 = vector.shape_cast %38 : vector<16x1xf32> to vector<1x16x1xf32>
    %cst_13 = arith.constant dense<0.000000e+00> : vector<1xf32>
    %40 = vector.multi_reduction <add>, %39, %cst_13 [1, 2] : vector<1x16x1xf32> to vector<1xf32>
    %41 = vector.shape_cast %40 : vector<1xf32> to vector<1x1x1xf32>
    %42 = vector.extract %41[0, 0, 0] : f32 from vector<1x1x1xf32>
    %43 = vector.broadcast %42 : f32 to vector<1x1xf32>
    %44 = arith.subf %43, %27 : vector<1x1xf32>
    %45 = vector.shape_cast %44 : vector<1x1xf32> to vector<1x1x1xf32>
    %c0_14 = arith.constant 0 : index
    %c0_15 = arith.constant 0 : index
    %c0_16 = arith.constant 0 : index
    %46 = vector.load %arg5[%c0_14, %c0_15, %c0_16] : memref<1x1x1xf32, #tpu.memory_space<vmem>>, vector<1x1x1xf32>
    tpu.vector_store %arg5[%c0_14, %c0_15, %c0_16], %45 {strides = array<i32>} : memref<1x1x1xf32, #tpu.memory_space<vmem>>, vector<1x1x1xf32>,
    return
  }
  func.func @transform_0(%arg0: i32) -> (i32, i32) {
    %c0_i32 = arith.constant 0 : i32
    %c0_i32_0 = arith.constant 0 : i32
    return %arg0, %c0_i32 : i32, i32
  }
  func.func @transform_1(%arg0: i32) -> (i32, i32) {
    %c0_i32 = arith.constant 0 : i32
    %c0_i32_0 = arith.constant 0 : i32
    return %arg0, %c0_i32 : i32, i32
  }
  func.func @transform_2(%arg0: i32) -> (i32, i32) {
    %c0_i32 = arith.constant 0 : i32
    %c0_i32_0 = arith.constant 0 : i32
    %c0_i32_1 = arith.constant 0 : i32
    return %c0_i32, %c0_i32_0 : i32, i32
  }
  func.func @transform_3(%arg0: i32) -> (i32, i32) {
    %c0_i32 = arith.constant 0 : i32
    %c0_i32_0 = arith.constant 0 : i32
    return %arg0, %c0_i32 : i32, i32
  }
  func.func @transform_4(%arg0: i32) -> (i32, i32, i32) {
    %c0_i32 = arith.constant 0 : i32
    %c0_i32_0 = arith.constant 0 : i32
    %c0_i32_1 = arith.constant 0 : i32
    return %arg0, %c0_i32, %c0_i32_0 : i32, i32, i32
  }
}

</mosaic_0001>

<bundles_post_ra>
// kernel: tpu_custom_call.1
= control target key start
LH: loop header
LB: loop body
LE: loop exit
PB: predicated region body
PF: predicated region fallthrough
CT: control target
= control target key end

     0   :  { %10 = vsyncpa [#allocation3], 0  ;;  %s1825_s0 = inlined_call_operand.vmem [shape: s32[16,1], index: 0, kind: input, shape index: {}]   ;;  %s1826_s1 = inlined_call_operand.vmem [shape: s32[16,1], index: 1, kind: input, shape index: {}]   ;;  %s1827_s2 = inlined_call_operand.hbm [shape: f32[128,128], index: 2, kind: input, shape index: {}]   ;;  %s1828_s3 = inlined_call_operand.hbm [shape: f32[16,128], index: 3, kind: output, shape index: {0}]   ;;  %s1829_s4 = inlined_call_operand.hbm [shape: f32[1,1,1], index: 4, kind: output, shape index: {1}]  }
   0x1   :  { %11 = vsyncpa [#allocation4], 0 }
   0x2   :  { %12 = vsyncpa [#allocation7], 0  ;;  %s1480_s15 = smov [#allocation2]   ;;  %s1408_s19 = scalar_lea.hbm %s1827_s2, 2048 }
   0x3   :  { %s22_s16 = sshll.u32 %s1480_s15, 4  ;;  %p1409_p0 = scmp.ne.s32.totalorder %s1827_s2, %s1408_s19  ;;  %s23_s16 = int_to_ptr.vmem [resolvable:$true] %s22_s16 }
   0x4   :  { %p1412_p1 = scmp.lt.u32.totalorder %s1408_s19, %s1827_s2 }
   0x6   :  { %p1414_p2 = pnand %p1412_p1, %p1409_p0 }
   0x8   :  { %1417 = shalt.err (!%p1414_p2)
}
   0x9   :  { %s1418_s24 = scalar_lea.vmem %s23_s16, 2048  ;;  %p1423_p4 = scmp.lt.s32.totalorder %s23_s16, %s23_s16 }
   0xa   :  { %p1419_p3 = scmp.ne.s32.totalorder %s23_s16, %s1418_s24  ;;  %p1424_p5 = scmp.lt.s32.totalorder %s1418_s24, %s1418_s24 }
   0xc   :  { %p1425_p6 = por %p1424_p5, %p1423_p4 }
   0xe   :  { %p1426_p7 = pnand %p1425_p6, %p1419_p3 }
  0x10   :  { %1429 = shalt.err (!%p1426_p7)
}
  0x11   :  { %s1481_s25 = smov 128   ;;  %s1482_s26 = smov 8  }
  0x12   :  { %28 = dma.hbm_to_vmem [thread:$0]  %s1827_s2, 2048, %s23_s16, [#allocation3], %s1481_s25, %s1481_s25, %s1482_s26  }
  0x13   :  { %1474 = dma.done.wait [#allocation3], 2048  }
  0x14   :  { %1475 = vsyncadd [#allocation3], 4294965248  ;;  %v1483_v0 = vmov 0   ;;  %v33_v1 = vld [vmem:[%s1825_s0] sm:$0xff]  ;;  %v36_v3 = vld [vmem:[#allocation2 + $0x8] sm:$0xff]  ;;  %vm810_vm4 = vcmask 7168  }
  0x15   :  { %1398 = vset.pattern.permute.xlu0 %v1483_v0  ;;  %1399 = vset.pattern.permute.xlu1 %v1483_v0  ;;  %v35_v2 = vld [vmem:[#allocation2] sm:$0xff]  ;;  %v37_v5 = vld [vmem:[#allocation2 + $0x10] sm:$0xff]  ;;  %v38_v6 = vld [vmem:[#allocation2 + $0x18] sm:$0xff]  ;;  %v69_v8 = vand.u32 4294901760, %v36_v3 }
  0x16   :  { %54 = vperm.xlu0 %1398, %v33_v1   ;;  %v66_v4 = vand.u32 4294901760, %v35_v2  ;;  %v34_v7 = vld [vmem:[%s1825_s0 + $0x8] sm:$0xff]  ;;  %v72_v9 = vand.u32 4294901760, %v37_v5  ;;  %v75_v10 = vand.u32 4294901760, %v38_v6  ;;  %v39_v11 = vld [vmem:[#allocation2 + $0x20] sm:$0xff]  ;;  %v41_v17 = vld [vmem:[#allocation2 + $0x30] sm:$0xff] }
  0x17   :  { %v40_v12 = vld [vmem:[#allocation2 + $0x28] sm:$0xff]  ;;  %v78_v15 = vand.u32 4294901760, %v39_v11  ;;  %v42_v18 = vld [vmem:[#allocation2 + $0x38] sm:$0xff]  ;;  %v84_v20 = vand.u32 4294901760, %v41_v17  ;;  %v43_v22 = vld [vmem:[#allocation2 + $0x40] sm:$0xff]  ;;  %v1584_v46 = vsub.f32 %v36_v3, %v69_v8 }
  0x18   :  { %v1534_v13 = vpack.c.bf16 %v69_v8, %v66_v4  ;;  %v1536_v14 = vpack.c.bf16 %v75_v10, %v72_v9  ;;  %v81_v16 = vand.u32 4294901760, %v40_v12  ;;  %v87_v21 = vand.u32 4294901760, %v42_v18  ;;  %v44_v23 = vld [vmem:[#allocation2 + $0x48] sm:$0xff]  ;;  %v1552_v28 = vld [vmem:[#allocation2 + $0x50] sm:$0xff]  ;;  %v1560_v32 = vld [vmem:[#allocation2 + $0x58] sm:$0xff] }
  0x19   :  { %v1546_v24 = vsub.f32 %v37_v5, %v72_v9  ;;  %v1548_v25 = vsub.f32 %v38_v6, %v75_v10  ;;  %v90_v26 = vand.u32 4294901760, %v43_v22  ;;  %v93_v27 = vand.u32 4294901760, %v44_v23  ;;  %v1576_v41 = vld [vmem:[#allocation2 + $0x60] sm:$0xff]  ;;  %v1580_v44 = vld [vmem:[#allocation2 + $0x68] sm:$0xff]  ;;  %v1604_v58 = vld [vmem:[#allocation2 + $0x70] sm:$0xff] }
  0x1a   :  { %57 = vperm.xlu0 %1398, %v34_v7   ;;  %1281 = vmatprep.subr.bf16.mxu0 %v1534_v13  ;;  %v1544_v19 = vpack.c.bf16 %v81_v16, %v78_v15  ;;  %v1558_v31 = vpack.c.bf16 %v87_v21, %v84_v20  ;;  %v96_v36 = vand.u32 4294901760, %v1552_v28  ;;  %v1567_v37 = vsub.f32 %v39_v11, %v78_v15  ;;  %v50_v61 = vld [vmem:[#allocation2 + $0x78] sm:$0xff] }
  0x1b   :  { %1185 = vmatprep.subr.bf16.mxu1 %v1534_v13  ;;  %1283 = vmatpush3.bf16.msra.mxu0 %v1534_v13  ;;  %v183_v29 = vand.u32 4294901760, %v1546_v24  ;;  %v190_v30 = vand.u32 4294901760, %v1548_v25  ;;  %v1569_v38 = vsub.f32 %v40_v12, %v81_v16  ;;  %v1573_v39 = vpack.c.bf16 %v93_v27, %v90_v26 }
  0x1c   :  { %1187 = vmatpush3.bf16.msra.mxu1 %v1534_v13  ;;  %1285 = vmatprep.subr.bf16.mxu0 %v1536_v14  ;;  %v99_v40 = vand.u32 4294901760, %v1560_v32  ;;  %v1582_v45 = vsub.f32 %v35_v2, %v66_v4  ;;  %v197_v47 = vand.u32 4294901760, %v1567_v37  ;;  %v1590_v50 = vsub.f32 %v41_v17, %v84_v20 }
  0x1d   :  { %1189 = vmatprep.subr.bf16.mxu1 %v1536_v14  ;;  %v1562_v33 = vpack.c.bf16 %v190_v30, %v183_v29  ;;  %v184_v34 = vsub.f32 %v1546_v24, %v183_v29  ;;  %v191_v35 = vsub.f32 %v1548_v25, %v190_v30  ;;  %v204_v48 = vand.u32 4294901760, %v1569_v38 }
  0x1e   :  { %v1592_v51 = vsub.f32 %v42_v18, %v87_v21  ;;  %v102_v52 = vand.u32 4294901760, %v1576_v41  ;;  %v198_v54 = vsub.f32 %v1567_v37, %v197_v47  ;;  %v1601_v56 = vpack.c.bf16 %v99_v40, %v96_v36 }
  0x1f   :  { %1287 = vmatpush3.bf16.msra.mxu0 %v1536_v14  ;;  %v185_v42 = vand.u32 4294901760, %v184_v34  ;;  %v192_v43 = vand.u32 4294901760, %v191_v35  ;;  %v1595_v53 = vpack.c.bf16 %v204_v48, %v197_v47  ;;  %v205_v55 = vsub.f32 %v1569_v38, %v204_v48 }
  0x20   :  { %1191 = vmatpush3.bf16.msra.mxu1 %v1536_v14  ;;  %1289 = vmatprep.subr.bf16.mxu0 %v1544_v19  ;;  %v105_v57 = vand.u32 4294901760, %v1580_v44  ;;  %v211_v59 = vand.u32 4294901760, %v1590_v50  ;;  %v218_v60 = vand.u32 4294901760, %v1592_v51  ;;  %v169_v62 = vand.u32 4294901760, %v1582_v45 }
  0x21   :  { %1193 = vmatprep.subr.bf16.mxu1 %v1544_v19  ;;  %v1588_v49 = vpack.c.bf16 %v192_v43, %v185_v42  ;;  %v176_v63 = vand.u32 4294901760, %v1584_v46  ;;  %v199_v0 = vand.u32 4294901760, %v198_v54  ;;  %v206_v1 = vand.u32 4294901760, %v205_v55 }
  0x22   :  { %v1612_v2 = vpack.c.bf16 %v218_v60, %v211_v59  ;;  %v212_v3 = vsub.f32 %v1590_v50, %v211_v59  ;;  %v219_v4 = vsub.f32 %v1592_v51, %v218_v60  ;;  %v1616_v5 = vsub.f32 %v43_v22, %v90_v26 }
  0x23   :  { %1291 = vmatpush3.bf16.msra.mxu0 %v1544_v19  ;;  %v108_v6 = vand.u32 4294901760, %v1604_v58  ;;  %v1619_v7 = vpack.c.bf16 %v206_v1, %v199_v0  ;;  %v1621_v8 = vsub.f32 %v44_v23, %v93_v27  ;;  %v111_v9 = vand.u32 4294901760, %v50_v61 }
  0x24   :  { %1195 = vmatpush3.bf16.msra.mxu1 %v1544_v19  ;;  %1293 = vmatprep.subr.bf16.mxu0 %v1558_v31  ;;  %v213_v10 = vand.u32 4294901760, %v212_v3  ;;  %v220_v11 = vand.u32 4294901760, %v219_v4  ;;  %v225_v12 = vand.u32 4294901760, %v1616_v5  ;;  %v1628_v15 = vpack.c.bf16 %v105_v57, %v102_v52 }
  0x25   :  { %1197 = vmatprep.subr.bf16.mxu1 %v1558_v31  ;;  %v170_v16 = vsub.f32 %v1582_v45, %v169_v62  ;;  %v177_v17 = vsub.f32 %v1584_v46, %v176_v63  ;;  %v232_v18 = vand.u32 4294901760, %v1621_v8  ;;  %v238_v22 = vsub.f32 %v1552_v28, %v96_v36 }
  0x26   :  { %v1633_v20 = vpack.c.bf16 %v220_v11, %v213_v10  ;;  %v226_v21 = vsub.f32 %v1616_v5, %v225_v12  ;;  %v245_v23 = vsub.f32 %v1560_v32, %v99_v40  ;;  %v1645_v35 = vpack.c.bf16 %v111_v9, %v108_v6 }
  0x27   :  { %1295 = vmatpush3.bf16.msra.mxu0 %v1558_v31  ;;  %v1638_v26 = vpack.c.bf16 %v232_v18, %v225_v12  ;;  %v233_v27 = vsub.f32 %v1621_v8, %v232_v18  ;;  %v239_v30 = vand.u32 4294901760, %v238_v22  ;;  %v171_v28 = vand.u32 4294901760, %v170_v16 }
  0x28   :  { %1199 = vmatpush3.bf16.msra.mxu1 %v1558_v31  ;;  %1297 = vmatprep.subr.bf16.mxu0 %v1573_v39  ;;  %v227_v29 = vand.u32 4294901760, %v226_v21  ;;  %v246_v34 = vand.u32 4294901760, %v245_v23  ;;  %v178_v36 = vand.u32 4294901760, %v177_v17  ;;  %v252_v47 = vsub.f32 %v1576_v41, %v102_v52 }
  0x29   :  { %1201 = vmatprep.subr.bf16.mxu1 %v1573_v39  ;;  %v234_v32 = vand.u32 4294901760, %v233_v27  ;;  %v240_v42 = vsub.f32 %v238_v22, %v239_v30  ;;  %v259_v54 = vsub.f32 %v1580_v44, %v105_v57  ;;  %v1312_v0 = vpack.c.bf16 %v176_v63, %v169_v62 }
  0x2a   :  { %v1647_v40 = vpack.c.bf16 %v246_v34, %v239_v30  ;;  %v247_v43 = vsub.f32 %v245_v23, %v246_v34  ;;  %v253_v60 = vand.u32 4294901760, %v252_v47  ;;  %v1216_v1 = vpack.c.bf16 %v178_v36, %v171_v28 }
  0x2b   :  { %1299 = vmatpush3.bf16.msra.mxu0 %v1573_v39  ;;  %v1650_v48 = vpack.c.bf16 %v234_v32, %v227_v29  ;;  %v241_v55 = vand.u32 4294901760, %v240_v42  ;;  %v260_v3 = vand.u32 4294901760, %v259_v54  ;;  %v266_v52 = vsub.f32 %v1604_v58, %v108_v6 }
  0x2c   :  { %1203 = vmatpush3.bf16.msra.mxu1 %v1573_v39  ;;  %1301 = vmatprep.subr.bf16.mxu0 %v1601_v56  ;;  %v248_v59 = vand.u32 4294901760, %v247_v43  ;;  %v254_v41 = vsub.f32 %v252_v47, %v253_v60  ;;  %v273_v44 = vsub.f32 %v50_v61, %v111_v9  ;;  %v1670_v9 = vpack.c.bf16 %v1584_v46, %v1582_v45 }
  0x2d   :  { %1205 = vmatprep.subr.bf16.mxu1 %v1601_v56  ;;  %v1660_v57 = vpack.c.bf16 %v260_v3, %v253_v60  ;;  %v261_v10 = vsub.f32 %v259_v54, %v260_v3  ;;  %v267_v12 = vand.u32 4294901760, %v266_v52  ;;  %v1674_v27 = vpack.c.bf16 %v1548_v25, %v1546_v24 }
  0x2e   :  { %v1657_v4 = vpack.c.bf16 %v248_v59, %v241_v55  ;;  %v255_v11 = vand.u32 4294901760, %v254_v41  ;;  %v274_v16 = vand.u32 4294901760, %v273_v44  ;;  %v1678_v29 = vpack.c.bf16 %v1569_v38, %v1567_v37 }
  0x2f   :  { %1303 = vmatpush3.bf16.msra.mxu0 %v1601_v56  ;;  %v262_v62 = vand.u32 4294901760, %v261_v10  ;;  %v268_v17 = vsub.f32 %v266_v52, %v267_v12  ;;  %v1682_v30 = vpack.c.bf16 %v1592_v51, %v1590_v50  ;;  %v1686_v34 = vpack.c.bf16 %v1621_v8, %v1616_v5 }
  0x30   :  { %1207 = vmatpush3.bf16.msra.mxu1 %v1601_v56  ;;  %1305 = vmatprep.subr.bf16.mxu0 %v1628_v15  ;;  %v1664_v63 = vpack.c.bf16 %v274_v16, %v267_v12  ;;  %v275_v18 = vsub.f32 %v273_v44, %v274_v16  ;;  %v1688_v28 = vpack.c.bf16 %v245_v23, %v238_v22  ;;  %v51_v24 = vlaneseq }
  0x31   :  { %1209 = vmatprep.subr.bf16.mxu1 %v1628_v15  ;;  %v1240_v21 = vpack.c.bf16 %v262_v62, %v255_v11  ;;  %v269_v58 = vand.u32 4294901760, %v268_v17  ;;  %v1690_v45 = vpack.c.bf16 %v259_v54, %v252_v47  ;;  %v1692_v46 = vpack.c.bf16 %v273_v44, %v266_v52 }
  0x32   :  { %v276_v61 = vand.u32 4294901760, %v275_v18  ;;  %v1694_v25 = vand.u32 127, %v51_v24  ;;  %v1484_v37 = vmov 0.0   ;;  %v1485_v47 = vmov 1.0  }
  0x33   :  { %1307 = vmatpush3.bf16.msra.mxu0 %v1628_v15 }
  0x34   :  { %1211 = vmatpush3.bf16.msra.mxu1 %v1628_v15  ;;  %1309 = vmatprep.subr.bf16.mxu0 %v1645_v35  ;;  %v1666_v6 = vpack.c.bf16 %v276_v61, %v269_v58 }
  0x35   :  { %1213 = vmatprep.subr.bf16.mxu1 %v1645_v35 }
  0x37   :  { %1311 = vmatpush3.bf16.msra.mxu0 %v1645_v35 }
  0x38   :  { %1215 = vmatpush3.bf16.msra.mxu1 %v1645_v35  ;;  %1313 = vmatprep.subr.bf16.mxu0 %v1312_v0 }
  0x39   :  { %1217 = vmatprep.subr.bf16.mxu1 %v1216_v1 }
  0x95   :  { %v55_v36 = vpop.permute.xlu0 %54 }
  0x96   :  { %vm59_vm0 = vcmp.eq.s32.totalorder %v1694_v25, %v55_v36 }
  0x97   :  { %v858_v38 = vsel %vm59_vm0, 1.0, %v1484_v37 }
  0x98   :  { %v147_v50 = vsub.f32 %v858_v38, %v858_v38 }
  0x99   :  { %v1699_v51 = vpop.permute.xlu0 %57 }
  0x9a   :  { %vm60_vm1 = vcmp.eq.s32.totalorder %v1694_v25, %v1699_v51  ;;  %v148_v5 = vand.u32 4294901760, %v147_v50 }
  0x9b   :  { %v859_v8 = vsel %vm60_vm1, 1.0, %v1484_v37 }
  0x9c   :  { %v1706_v22 = vsub.f32 %v859_v8, %v859_v8  ;;  %1111 = vmatprep.mubr.f32.mxu0 %v148_v5  ;;  %v149_v23 = vsub.f32 %v147_v50, %v148_v5 }
  0x9e   :  { %v150_v32 = vand.u32 4294901760, %v149_v23  ;;  %v158_v42 = vand.u32 4294901760, %v1706_v22 }
  0xa0   :  { %1006 = vmatprep.mubr.f32.mxu1 %v150_v32  ;;  %1112 = vmatmul.mubr.f32.vlgmr.msra.gmra.mrb[0].mxu0 %v158_v42  ;;  %v159_v43 = vsub.f32 %v1706_v22, %v158_v42 }
  0xa1   :  { %1315 = vmatpush3.bf16.msra.mxu0 %v1312_v0  ;;  %1146 = vmatprep.mubr.msk.f32.mxu0 %vm59_vm0, %v1485_v47 }
  0xa2   :  { %1317 = vmatprep.subr.bf16.mxu0 %v1562_v33  ;;  %v160_v54 = vand.u32 4294901760, %v159_v43 }
  0xa4   :  { %1007 = vmatmul.mubr.f32.vlgmr.msra.gmra.mrb[0].mxu1 %v160_v54 }
  0xa5   :  { %1219 = vmatpush3.bf16.msra.mxu1 %v1216_v1  ;;  %1319 = vmatpush3.bf16.msra.mxu0 %v1562_v33 }
  0xa6   :  { %1041 = vmatprep.mubr.msk.f32.mxu1 %vm59_vm0, %v1485_v47  ;;  %1221 = vmatprep.subr.bf16.mxu1 %v1588_v49 }
  0xa7   :  { %1321 = vmatprep.subr.bf16.mxu0 %v1595_v53 }
  0xa9   :  { %1223 = vmatpush3.bf16.msra.mxu1 %v1588_v49  ;;  %1323 = vmatpush3.bf16.msra.mxu0 %v1595_v53 }
  0xaa   :  { %1225 = vmatprep.subr.bf16.mxu1 %v1619_v7  ;;  %1325 = vmatprep.subr.bf16.mxu0 %v1612_v2 }
  0xad   :  { %1227 = vmatpush3.bf16.msra.mxu1 %v1619_v7  ;;  %1327 = vmatpush3.bf16.msra.mxu0 %v1612_v2 }
  0xae   :  { %1229 = vmatprep.subr.bf16.mxu1 %v1633_v20  ;;  %1329 = vmatprep.subr.bf16.mxu0 %v1638_v26 }
  0xb1   :  { %1231 = vmatpush3.bf16.msra.mxu1 %v1633_v20  ;;  %1331 = vmatpush3.bf16.msra.mxu0 %v1638_v26 }
  0xb2   :  { %1233 = vmatprep.subr.bf16.mxu1 %v1650_v48  ;;  %1333 = vmatprep.subr.bf16.mxu0 %v1647_v40 }
  0xb5   :  { %1235 = vmatpush3.bf16.msra.mxu1 %v1650_v48  ;;  %1335 = vmatpush3.bf16.msra.mxu0 %v1647_v40  ;;  %v760_v40 = vld [vmem:[%s1826_s1 + $0x8] sm:$0xff] }
  0xb6   :  { %1237 = vmatprep.subr.bf16.mxu1 %v1657_v4  ;;  %1337 = vmatprep.subr.bf16.mxu0 %v1660_v57 }
  0xb9   :  { %1239 = vmatpush3.bf16.msra.mxu1 %v1657_v4  ;;  %1339 = vmatpush3.bf16.msra.mxu0 %v1660_v57 }
  0xba   :  { %1241 = vmatprep.subr.bf16.mxu1 %v1240_v21  ;;  %1341 = vmatprep.subr.bf16.mxu0 %v1664_v63 }
  0xbd   :  { %1243 = vmatpush3.bf16.msra.mxu1 %v1240_v21  ;;  %1343 = vmatpush3.bf16.msra.mxu0 %v1664_v63 }
  0xbe   :  { %1245 = vmatprep.subr.bf16.mxu1 %v1666_v6  ;;  %1345 = vmatprep.subr.bf16.mxu0 %v1534_v13 }
  0xc0   :  { %1147 = vmatmul.mubr.msk.f32.vlgmr.msra.gmra.mrb[0].mxu0 %vm60_vm1, %v1485_v47 }
  0xc1   :  { %1247 = vmatpush3.bf16.msra.mxu1 %v1666_v6  ;;  %1347 = vmatpush3.bf16.msra.mxu0 %v1534_v13 }
  0xc2   :  { %1181 = vmatprep.mubr.msk.f32.mxu0 %vm59_vm0, %v1485_v47  ;;  %1249 = vmatprep.subr.bf16.mxu1 %v1670_v9 }
  0xc3   :  { %1349 = vmatprep.subr.bf16.mxu0 %v1536_v14 }
  0xc4   :  { %1042 = vmatmul.mubr.msk.f32.vlgmr.msra.gmra.mrb[0].mxu1 %vm60_vm1, %v1485_v47 }
  0xc5   :  { %1251 = vmatpush3.bf16.msra.mxu1 %v1670_v9  ;;  %1076 = vmatprep.mubr.f32.mxu1 %v147_v50 }
  0xc6   :  { %1351 = vmatpush3.bf16.msra.mxu0 %v1536_v14  ;;  %1253 = vmatprep.subr.bf16.mxu1 %v1674_v27 }
  0xc7   :  { %1353 = vmatprep.subr.bf16.mxu0 %v1544_v19 }
  0xc9   :  { %1255 = vmatpush3.bf16.msra.mxu1 %v1674_v27 }
  0xca   :  { %1355 = vmatpush3.bf16.msra.mxu0 %v1544_v19  ;;  %1257 = vmatprep.subr.bf16.mxu1 %v1678_v29 }
  0xcb   :  { %1357 = vmatprep.subr.bf16.mxu0 %v1558_v31 }
  0xcd   :  { %1259 = vmatpush3.bf16.msra.mxu1 %v1678_v29 }
  0xce   :  { %1359 = vmatpush3.bf16.msra.mxu0 %v1558_v31  ;;  %1261 = vmatprep.subr.bf16.mxu1 %v1682_v30 }
  0xcf   :  { %1361 = vmatprep.subr.bf16.mxu0 %v1573_v39 }
  0xd1   :  { %1263 = vmatpush3.bf16.msra.mxu1 %v1682_v30 }
  0xd2   :  { %1363 = vmatpush3.bf16.msra.mxu0 %v1573_v39  ;;  %1265 = vmatprep.subr.bf16.mxu1 %v1686_v34 }
  0xd3   :  { %1365 = vmatprep.subr.bf16.mxu0 %v1601_v56 }
  0xd5   :  { %1267 = vmatpush3.bf16.msra.mxu1 %v1686_v34 }
  0xd6   :  { %1367 = vmatpush3.bf16.msra.mxu0 %v1601_v56  ;;  %1269 = vmatprep.subr.bf16.mxu1 %v1688_v28 }
  0xd7   :  { %1369 = vmatprep.subr.bf16.mxu0 %v1628_v15 }
  0xd9   :  { %1271 = vmatpush3.bf16.msra.mxu1 %v1688_v28 }
  0xda   :  { %1371 = vmatpush3.bf16.msra.mxu0 %v1628_v15  ;;  %1273 = vmatprep.subr.bf16.mxu1 %v1690_v45 }
  0xdb   :  { %1373 = vmatprep.subr.bf16.mxu0 %v1645_v35 }
  0xdd   :  { %1275 = vmatpush3.bf16.msra.mxu1 %v1690_v45 }
  0xde   :  { %1375 = vmatpush3.bf16.msra.mxu0 %v1645_v35  ;;  %1277 = vmatprep.subr.bf16.mxu1 %v1692_v46  ;;  %v759_v35 = vld [vmem:[%s1826_s1] sm:$0xff]  ;;  %s1486_s1 = smov [#allocation5]  }
  0xdf   :  { %s832_s9 = sshll.u32 %s1486_s1, 4  ;;  %s833_s9 = int_to_ptr.vmem [resolvable:$true] %s832_s9 }
  0xe0   :  { %s1430_s10 = scalar_lea.vmem %s833_s9, 256  ;;  %p1435_p9 = scmp.lt.s32.totalorder %s833_s9, %s833_s9 }
  0xe1   :  { %1182 = vmatmul.mubr.msk.f32.vlgmr.msra.gmra.mrb[0].mxu0 %vm60_vm1, %v1485_v47  ;;  %1279 = vmatpush3.bf16.msra.mxu1 %v1692_v46  ;;  %p1431_p8 = scmp.ne.s32.totalorder %s833_s9, %s1430_s10  ;;  %p1436_p10 = scmp.lt.s32.totalorder %s1430_s10, %s1430_s10 }
  0xe3   :  { %p1437_p11 = por %p1436_p10, %p1435_p9 }
  0xe4   :  { %1077 = vmatmul.mubr.f32.vlgmr.msra.gmra.mrb[0].mxu1 %v1706_v22 }
  0xe5   :  { %p1438_p12 = pnand %p1437_p11, %p1431_p8 }
 0x1b4   :  { %v1183_v13 = vpop.f32.mrb[0].mxu0 }
 0x1b5   :  { %v739_v14 = vpop.f32.mrb[1].mxu0 }
 0x1b7   :  { %v1078_v19 = vpop.f32.mrb[0].mxu1 }
 0x1b8   :  { %v1376_v31 = vadd.f32 %v1183_v13, %v1078_v19  ;;  %v423_v33 = vpop.f32.mrb[1].mxu1 }
 0x1b9   :  { %v1377_v39 = vadd.f32 %v739_v14, %v423_v33 }
 0x1ba   :  { %750 = vst [vmem:[#allocation5 + $0x8] sm:$0xff] %v1376_v31 }
 0x1bb   :  { %749 = vst [vmem:[#allocation5] sm:$0xff] %v1377_v39  ;;  %788 = vmax.xlane.f32.xlu1 %v1377_v39 }
 0x1bf   :  { %790 = vmax.xlane.f32.xlu1 %v1376_v31 }
 0x248   :  { %v789_v49 = vpop.xlane.xlu1 %788 }
 0x249   :  { %v792_v53 = vsub.f32 %v1377_v39, %v789_v49 }
 0x24b   :  { %v794_v56 = vmul.f32 1.442695, %v792_v53 }
 0x24c   :  { %v791_v2 = vpop.xlane.xlu1 %790 }
 0x24d   :  { %1400 = vpow2.f32 %v794_v56  ;;  %v793_v7 = vsub.f32 %v1376_v31, %v791_v2 }
 0x24f   :  { %v796_v15 = vmul.f32 1.442695, %v793_v7 }
 0x251   :  { %1402 = vpow2.f32 %v796_v15 }
 0x257   :  { %v1401_v20 = vpop.eup %1400 }
 0x258   :  { %798 = vadd.xlane.f32.xlu0 %v1401_v20 }
 0x25b   :  { %v1403_v26 = vpop.eup %1402 }
 0x25c   :  { %800 = vadd.xlane.f32.xlu1 %v1403_v26 }
 0x26d   :  { %762 = vperm.xlu1 %1399, %v759_v35  }
 0x271   :  { %765 = vperm.xlu1 %1399, %v760_v40  }
 0x2e5   :  { %v799_v48 = vpop.xlane.xlu0 %798 }
 0x2e6   :  { %1404 = vlog2.f32 %v799_v48 }
 0x2e9   :  { %v801_v55 = vpop.xlane.xlu1 %800 }
 0x2ea   :  { %1406 = vlog2.f32 %v801_v55 }
 0x2ed   :  { %v763_v59 = vpop.permute.xlu1 %762 }
 0x2ee   :  { %vm767_vm2 = vcmp.eq.s32.totalorder %v1694_v25, %v763_v59 }
 0x2ef   :  { %v775_v3 = vsel %vm767_vm2, %v1377_v39, 0.0 }
 0x2f0   :  { %v1405_v60 = vpop.eup %1404 }
 0x2f1   :  { %v803_v0 = vmul.f32 0.6931472, %v1405_v60  ;;  %v766_v1 = vpop.permute.xlu1 %765 }
 0x2f2   :  { %vm768_vm3 = vcmp.eq.s32.totalorder %v1694_v25, %v766_v1 }
 0x2f3   :  { %v776_v4 = vsel %vm768_vm3, %v1376_v31, 0.0  ;;  %v806_v57 = vadd.f32 %v803_v0, %v789_v49 }
 0x2f4   :  { %v1407_v41 = vpop.eup %1406  ;;  %v777_v52 = vadd.f32 %v776_v4, %v775_v3 }
 0x2f5   :  { %v805_v44 = vmul.f32 0.6931472, %v1407_v41  ;;  %v811_v11 = vsel %vm810_vm4, %v806_v57, 0.0 }
 0x2f6   :  { %778 = vadd.xlane.f32.xlu1 %v777_v52 }
 0x2f7   :  { %v807_v10 = vadd.f32 %v805_v44, %v791_v2 }
 0x2f9   :  { %v812_v12 = vsel %vm810_vm4, %v807_v10, 0.0 }
 0x2fa   :  { %v813_v16 = vadd.f32 %v812_v12, %v811_v11 }
 0x2fc   :  { %814 = vadd.xlane.f32.xlu0 %v813_v16 }
 0x2fd   :  { %1441 = shalt.err (!%p1438_p12)
}
 0x2fe   :  { %s1442_s13 = scalar_lea.hbm %s1828_s3, 256 }
 0x2ff   :  { %p1443_p13 = scmp.ne.s32.totalorder %s1828_s3, %s1442_s13  ;;  %p1446_p0 = scmp.lt.u32.totalorder %s1442_s13, %s1828_s3 }
 0x301   :  { %p1448_p1 = pnand %p1446_p0, %p1443_p13 }
 0x303   :  { %1451 = shalt.err (!%p1448_p1)
}
 0x304   :  { %838 = dma.vmem_to_hbm [thread:$0]  %s833_s9, 256, %s1828_s3, [#allocation4], %s1481_s25, %s1481_s25, %s1482_s26   ;;  %vm825_vm5 = vcmask 0  }
 0x305   :  { %s1487_s21 = smov [#allocation6]  }
 0x306   :  { %s845_s22 = sshll.u32 %s1487_s21, 4  ;;  %s846_s22 = int_to_ptr.vmem [resolvable:$true] %s845_s22 }
 0x307   :  { %s1452_s23 = scalar_lea.vmem %s846_s22, 16  ;;  %s1456_s24 = scalar_lea.vmem %s846_s22, 32 }
 0x308   :  { %p1453_p2 = scmp.ne.s32.totalorder %s846_s22, %s1452_s23  ;;  %p1457_p3 = scmp.lt.s32.totalorder %s846_s22, %s846_s22 }
 0x309   :  { %p1458_p4 = scmp.lt.s32.totalorder %s1456_s24, %s1452_s23 }
 0x30b   :  { %p1459_p5 = por %p1458_p4, %p1457_p3 }
 0x30d   :  { %p1460_p6 = pnand %p1459_p5, %p1453_p2 }
 0x383   :  { %v779_v62 = vpop.xlane.xlu1 %778 }
 0x384   :  { %v780_v63 = vrot.slane %v779_v62, 4 }
 0x386   :  { %v781_v17 = vadd.f32 %v780_v63, %v779_v62 }
 0x388   :  { %v782_v18 = vrot.slane %v781_v17, 2 }
 0x389   :  { %v815_v21 = vpop.xlane.xlu0 %814 }
 0x38a   :  { %v816_v58 = vrot.slane %v815_v21, 4  ;;  %v783_v61 = vadd.f32 %v782_v18, %v781_v17 }
 0x38c   :  { %v817_v6 = vadd.f32 %v816_v58, %v815_v21  ;;  %v784_v9 = vrot.slane %v783_v61, 1 }
 0x38e   :  { %v818_v27 = vrot.slane %v817_v6, 2  ;;  %v785_v29 = vadd.f32 %v784_v9, %v783_v61 }
 0x390   :  { %v819_v30 = vadd.f32 %v818_v27, %v817_v6  ;;  %1386 = vpush %v785_v29 }
 0x392   :  { %v820_v34 = vrot.slane %v819_v30, 1 }
 0x394   :  { %v821_v28 = vadd.f32 %v820_v34, %v819_v30 }
 0x396   :  { %1388 = vpush %v821_v28 }
 0x3c1   :  { %s1387_s20 = spop %1386 }
 0x3c2   :  { %v787_v45 = vstv %s1387_s20 }
 0x3c7   :  { %s1389_s3 = spop %1388 }
 0x3c8   :  { %v823_v46 = vstv %s1389_s3 }
 0x3c9   :  { %v824_v24 = vsub.f32 %v823_v46, %v787_v45 }
 0x3cb   :  { %826 = vst.msk [vmem:[#allocation6] sm:$0x1] %vm825_vm5, %v824_v24 }
 0x3cc   :  { %1463 = shalt.err (!%p1460_p6)
}
 0x3cd   :  { %s1464_s27 = scalar_lea.hbm %s1829_s4, 16 }
 0x3ce   :  { %p1465_p7 = scmp.ne.s32.totalorder %s1829_s4, %s1464_s27  ;;  %p1468_p8 = scmp.lt.u32.totalorder %s1464_s27, %s1829_s4 }
 0x3d0   :  { %p1470_p9 = pnand %p1468_p8, %p1465_p7 }
 0x3d2   :  { %1473 = shalt.err (!%p1470_p9)
}
 0x3d3   :  { %848 = dma.vmem_to_hbm [thread:$0]  %s846_s22, 16, %s1829_s4, [#allocation7]  }
 0x3d4   :  { %1476 = dma.done.wait [#allocation4], 256  }
 0x3d5   :  { %1477 = vsyncadd [#allocation4], 4294967040 }
 0x3d6   :  { %1478 = dma.done.wait [#allocation7], 16  }
 0x3d7   :  { %1479 = vsyncadd [#allocation7], 4294967280 }
 0x3d8   :  { %855 = vsyncpa [#allocation3], 1 }
 0x3d9   :  { %856 = vsyncpa [#allocation4], 1 }
 0x3da   :  { %857 = vsyncpa [#allocation7], 1 }

</bundles_post_ra>
